<compile_context>
chip_gen: v5e
topology: v5e:2x2
jax: 0.10.0
libtpu: 0.0.40
codegen_flags: <defaults>
</compile_context>

<pallas_src>
import functools
import random

import jax
import jax.numpy as jnp
from jax.experimental import pallas as pl
from jax.experimental.pallas import tpu as pltpu

_LANE = 128
_SUB = 8
_MAX_BLOCK_ROWS = 1024   # 1024 x 128 x 4B = 512 KiB per f32 block


def _mix_clamp_kernel(x_ref, n_ref, o_ref, *, lam):
    dt = x_ref.dtype
    one_minus_l = jnp.asarray(1.0 - lam, dt)
    lam_c = jnp.asarray(lam, dt)
    mixed = one_minus_l * x_ref[...] + lam_c * n_ref[...]
    o_ref[...] = jnp.clip(
        mixed, jnp.asarray(-1.0, dt), jnp.asarray(1.0, dt)
    ).astype(o_ref.dtype)


def mix_clamp(x, noise, lam):
    """clamp((1 - lam) * x + lam * noise, -1, 1) over 1-D waveforms (Pallas)."""
    assert x.ndim == 1 and x.shape == noise.shape
    t = x.shape[0]
    dtype = x.dtype

    pad = (-t) % _LANE
    if pad:  # slow path only when the waveform length isn't lane-aligned
        x = jnp.pad(x, (0, pad))
        noise = jnp.pad(noise, (0, pad))
    rows = (t + pad) // _LANE
    x2 = x.reshape(rows, _LANE)
    n2 = noise.astype(dtype).reshape(rows, _LANE)

    # Large blocks (up to 512 KiB f32); last partial block is masked by Pallas.
    block_rows = min(_MAX_BLOCK_ROWS, ((rows + _SUB - 1) // _SUB) * _SUB)
    grid = (pl.cdiv(rows, block_rows),)

    kernel = functools.partial(_mix_clamp_kernel, lam=float(lam))
    out2 = pl.pallas_call(
        kernel,
        out_shape=jax.ShapeDtypeStruct((rows, _LANE), dtype),
        grid=grid,
        in_specs=[pl.BlockSpec((block_rows, _LANE), lambda i: (i, 0)),
                  pl.BlockSpec((block_rows, _LANE), lambda i: (i, 0))],
        out_specs=pl.BlockSpec((block_rows, _LANE), lambda i: (i, 0)),
        compiler_params=pltpu.CompilerParams(
            dimension_semantics=("parallel",)),
    )(x2, n2)

    out = out2.reshape(-1)
    if pad:
        out = out[:t]
    return out


def add_noise_forward(x, noises, *, min_lambda=0.5, max_lambda=0.8, rng=random):
    """Replicates AddNoise.forward; `noises` is a Python list of 1-D jnp arrays."""
    # Original code: random.uniform(min_lambda, min_lambda) -> always min_lambda.
    lam = rng.uniform(min_lambda, min_lambda)
    noise = rng.sample(noises, 1)[0]
    t = x.shape[0]
    tn = noise.shape[0]
    if tn > t:
        noise_start = rng.randint(0, tn - t)
        aligned = noise[noise_start:noise_start + t]
    else:
        x_start = rng.randint(0, t - tn)
        aligned = jnp.zeros((t,), x.dtype).at[x_start:x_start + tn].set(
            noise.astype(x.dtype))
    return mix_clamp(x, aligned, lam)


if __name__ == "__main__":
    key = jax.random.PRNGKey(0)
    kx, kn1, kn2 = jax.random.split(key, 3)

    T = 16000  # 1 second of audio at 16 kHz (matches the module's sample_rate)
    x = jax.random.uniform(kx, (T,), jnp.float32, minval=-1.0, maxval=1.0)
    # TODO(synk): the module loads real noise WAVs via torchaudio; synthetic here.
    noise_long = jax.random.uniform(kn1, (24000,), jnp.float32, -1.0, 1.0)
    noise_short = jax.random.uniform(kn2, (6000,), jnp.float32, -1.0, 1.0)

    # Direct kernel correctness check against a pure-jnp reference.
    lam = 0.5
    aligned = noise_long[:T]
    y = jax.block_until_ready(mix_clamp(x, aligned, lam))
    ref = jnp.clip((1.0 - lam) * x + lam * aligned, -1.0, 1.0)
    assert y.shape == x.shape and y.dtype == x.dtype
    assert float(jnp.max(jnp.abs(y - ref))) < 1e-6

    # Exercise both forward branches (noise longer / shorter than x).
    rng = random.Random(0)
    y_long = add_noise_forward(x, [noise_long], min_lambda=0.5, max_lambda=0.8, rng=rng)
    y_short = add_noise_forward(x, [noise_short], min_lambda=0.5, max_lambda=0.8, rng=rng)
    jax.block_until_ready((y_long, y_short))
    assert float(jnp.max(jnp.abs(y_long))) <= 1.0 + 1e-6
    assert float(jnp.max(jnp.abs(y_short))) <= 1.0 + 1e-6

    print("KERNEL_OK")
</pallas_src>

<mosaic_0001>
module attributes {stable_mosaic.version = 11 : i64} {
  func.func @_mix_clamp_kernel(%arg0: i32, %arg1: memref<128x128xf32, #tpu.memory_space<vmem>>, %arg2: memref<128x128xf32, #tpu.memory_space<vmem>>, %arg3: memref<128x128xf32, #tpu.memory_space<vmem>>) attributes {dimension_semantics = [#tpu.dimension_semantics<parallel>], iteration_bounds = array<i64: 1>, scalar_prefetch = 0 : i64, scratch_operands = 0 : i64, tpu.core_type = #tpu.core_type<tc>, window_params = [{transform_indices = @transform_0, window_bounds = array<i64: 128, 128>}, {transform_indices = @transform_1, window_bounds = array<i64: 128, 128>}, {transform_indices = @transform_2, window_bounds = array<i64: 128, 128>}]} {
    %c0 = arith.constant 0 : index
    %c0_0 = arith.constant 0 : index
    %0 = vector.load %arg1[%c0, %c0_0] : memref<128x128xf32, #tpu.memory_space<vmem>>, vector<128x128xf32>
    %cst = arith.constant 5.000000e-01 : f32
    %1 = vector.broadcast %cst : f32 to vector<128x128xf32>
    %2 = arith.mulf %1, %0 : vector<128x128xf32>
    %c0_1 = arith.constant 0 : index
    %c0_2 = arith.constant 0 : index
    %3 = vector.load %arg2[%c0_1, %c0_2] : memref<128x128xf32, #tpu.memory_space<vmem>>, vector<128x128xf32>
    %cst_3 = arith.constant 5.000000e-01 : f32
    %4 = vector.broadcast %cst_3 : f32 to vector<128x128xf32>
    %5 = arith.mulf %4, %3 : vector<128x128xf32>
    %6 = arith.addf %2, %5 : vector<128x128xf32>
    %cst_4 = arith.constant -1.000000e+00 : f32
    %cst_5 = arith.constant 1.000000e+00 : f32
    %7 = vector.broadcast %cst_4 : f32 to vector<128x128xf32>
    %8 = arith.maximumf %7, %6 : vector<128x128xf32>
    %9 = vector.broadcast %cst_5 : f32 to vector<128x128xf32>
    %10 = arith.minimumf %9, %8 : vector<128x128xf32>
    %c0_6 = arith.constant 0 : index
    %c0_7 = arith.constant 0 : index
    %11 = vector.load %arg3[%c0_6, %c0_7] : memref<128x128xf32, #tpu.memory_space<vmem>>, vector<128x128xf32>
    tpu.vector_store %arg3[%c0_6, %c0_7], %10 {strides = array<i32>} : memref<128x128xf32, #tpu.memory_space<vmem>>, vector<128x128xf32>,
    return
  }
  func.func @transform_0(%arg0: i32) -> (i32, i32) {
    %c0_i32 = arith.constant 0 : i32
    %c0_i32_0 = arith.constant 0 : i32
    return %arg0, %c0_i32 : i32, i32
  }
  func.func @transform_1(%arg0: i32) -> (i32, i32) {
    %c0_i32 = arith.constant 0 : i32
    %c0_i32_0 = arith.constant 0 : i32
    return %arg0, %c0_i32 : i32, i32
  }
  func.func @transform_2(%arg0: i32) -> (i32, i32) {
    %c0_i32 = arith.constant 0 : i32
    %c0_i32_0 = arith.constant 0 : i32
    return %arg0, %c0_i32 : i32, i32
  }
}

</mosaic_0001>

<bundles_post_ra>
// kernel: tpu_custom_call.1
= control target key start
LH: loop header
LB: loop body
LE: loop exit
PB: predicated region body
PF: predicated region fallthrough
CT: control target
= control target key end

     0   :  { %7 = vsyncpa [#allocation3], 0  ;;  %s329_s0 = inlined_call_operand.hbm [shape: f32[125,128], index: 0, kind: input, shape index: {}]   ;;  %s330_s1 = inlined_call_operand.hbm [shape: f32[125,128], index: 1, kind: input, shape index: {}]   ;;  %s331_s2 = inlined_call_operand.hbm [shape: f32[125,128], index: 2, kind: output, shape index: {}]  }
   0x1   :  { %8 = vsyncpa [#allocation6], 0 }
   0x2   :  { %9 = vsyncpa [#allocation4], 0  ;;  %s14_s11 = sshll.u32 %s329_s0, 4  ;;  %s291_s12 = smov [#allocation2]   ;;  %s15_s11 = int_to_ptr.hbm [resolvable:$true] %s14_s11 }
   0x3   :  { %s16_s13 = sshll.u32 %s291_s12, 4  ;;  %s27_s16 = sshll.u32 %s330_s1, 4  ;;  %s17_s13 = int_to_ptr.vmem [resolvable:$true] %s16_s13  ;;  %s28_s16 = int_to_ptr.hbm [resolvable:$true] %s27_s16 }
   0x4   :  { %s292_s17 = smov 128   ;;  %s293_s18 = smov 8  }
   0x5   :  { %22 = dma.hbm_to_vmem [thread:$0]  %s15_s11, 2048, %s17_s13, [#allocation3], %s292_s17, %s292_s17, %s293_s18  }
   0x6   :  { %s294_s19 = smov [#allocation5]  }
   0x7   :  { %s29_s20 = sshll.u32 %s294_s19, 4  ;;  %s30_s20 = int_to_ptr.vmem [resolvable:$true] %s29_s20 }
   0x8   :  { %35 = dma.hbm_to_vmem [thread:$0]  %s28_s16, 2048, %s30_s20, [#allocation6], %s292_s17, %s292_s17, %s293_s18  }
   0x9   :  { %285 = dma.done.wait [#allocation3], 2048  }
   0xa   :  { %286 = vsyncadd [#allocation3], 4294965248 }
   0xb   :  { %287 = dma.done.wait [#allocation6], 2048  }
   0xc   :  { %288 = vsyncadd [#allocation6], 4294965248  ;;  %v44_v0 = vld [vmem:[#allocation2] sm:$0xff]  ;;  %v45_v2 = vld [vmem:[#allocation2 + $0x8] sm:$0xff]  ;;  %s295_s0 = smov [#allocation7]   ;;  %s178_s23 = sshll.u32 %s331_s2, 4  ;;  %s179_s23 = int_to_ptr.hbm [resolvable:$true] %s178_s23 }
   0xd   :  { %v76_v1 = vld [vmem:[#allocation5] sm:$0xff]  ;;  %v60_v3 = vmul.f32 0.5, %v44_v0  ;;  %v61_v5 = vmul.f32 0.5, %v45_v2  ;;  %v77_v6 = vld [vmem:[#allocation5 + $0x8] sm:$0xff]  ;;  %v46_v7 = vld [vmem:[#allocation2 + $0x10] sm:$0xff]  ;;  %s176_s1 = sshll.u32 %s295_s0, 4  ;;  %s177_s1 = int_to_ptr.vmem [resolvable:$true] %s176_s1 }
   0xe   :  { %v92_v4 = vmul.f32 0.5, %v76_v1  ;;  %v78_v8 = vld [vmem:[#allocation5 + $0x10] sm:$0xff]  ;;  %v93_v9 = vmul.f32 0.5, %v77_v6  ;;  %v62_v10 = vmul.f32 0.5, %v46_v7  ;;  %v47_v12 = vld [vmem:[#allocation2 + $0x18] sm:$0xff]  ;;  %v48_v14 = vld [vmem:[#allocation2 + $0x20] sm:$0xff] }
   0xf   :  { %v94_v11 = vmul.f32 0.5, %v78_v8  ;;  %v79_v13 = vld [vmem:[#allocation5 + $0x18] sm:$0xff]  ;;  %v63_v16 = vmul.f32 0.5, %v47_v12  ;;  %v64_v18 = vmul.f32 0.5, %v48_v14  ;;  %v80_v19 = vld [vmem:[#allocation5 + $0x20] sm:$0xff]  ;;  %v49_v20 = vld [vmem:[#allocation2 + $0x28] sm:$0xff] }
  0x10   :  { %v108_v15 = vadd.f32 %v92_v4, %v60_v3  ;;  %v95_v17 = vmul.f32 0.5, %v79_v13  ;;  %v81_v21 = vld [vmem:[#allocation5 + $0x28] sm:$0xff]  ;;  %v109_v22 = vadd.f32 %v93_v9, %v61_v5  ;;  %v96_v24 = vmul.f32 0.5, %v80_v19  ;;  %v50_v26 = vld [vmem:[#allocation2 + $0x30] sm:$0xff]  ;;  %v51_v28 = vld [vmem:[#allocation2 + $0x38] sm:$0xff] }
  0x11   :  { %v110_v23 = vadd.f32 %v94_v11, %v62_v10  ;;  %v65_v25 = vmul.f32 0.5, %v49_v20  ;;  %v82_v27 = vld [vmem:[#allocation5 + $0x30] sm:$0xff]  ;;  %v97_v31 = vmul.f32 0.5, %v81_v21  ;;  %v66_v32 = vmul.f32 0.5, %v50_v26  ;;  %v83_v33 = vld [vmem:[#allocation5 + $0x38] sm:$0xff]  ;;  %v52_v34 = vld [vmem:[#allocation2 + $0x40] sm:$0xff] }
  0x12   :  { %v192_v29 = vclamps-f32 %v108_v15, 1.0  ;;  %v111_v30 = vadd.f32 %v95_v17, %v63_v16  ;;  %v84_v35 = vld [vmem:[#allocation5 + $0x40] sm:$0xff]  ;;  %v193_v36 = vclamps-f32 %v109_v22, 1.0  ;;  %v112_v38 = vadd.f32 %v96_v24, %v64_v18  ;;  %v53_v40 = vld [vmem:[#allocation2 + $0x48] sm:$0xff]  ;;  %v54_v46 = vld [vmem:[#allocation2 + $0x50] sm:$0xff] }
  0x13   :  { %v194_v37 = vclamps-f32 %v110_v23, 1.0  ;;  %v98_v39 = vmul.f32 0.5, %v82_v27  ;;  %v85_v41 = vld [vmem:[#allocation5 + $0x48] sm:$0xff]  ;;  %v113_v43 = vadd.f32 %v97_v31, %v65_v25  ;;  %v67_v44 = vmul.f32 0.5, %v51_v28  ;;  %v86_v47 = vld [vmem:[#allocation5 + $0x50] sm:$0xff]  ;;  %v55_v52 = vld [vmem:[#allocation2 + $0x58] sm:$0xff] }
  0x14   :  { %156 = vst [vmem:[#allocation7] sm:$0xff] %v192_v29  ;;  %v195_v42 = vclamps-f32 %v111_v30, 1.0  ;;  %v99_v45 = vmul.f32 0.5, %v83_v33  ;;  %v196_v48 = vclamps-f32 %v112_v38, 1.0  ;;  %v68_v50 = vmul.f32 0.5, %v52_v34  ;;  %v87_v53 = vld [vmem:[#allocation5 + $0x58] sm:$0xff] }
  0x15   :  { %157 = vst [vmem:[#allocation7 + $0x8] sm:$0xff] %v193_v36  ;;  %v114_v49 = vadd.f32 %v98_v39, %v66_v32  ;;  %v100_v51 = vmul.f32 0.5, %v84_v35  ;;  %v197_v54 = vclamps-f32 %v113_v43, 1.0  ;;  %v69_v56 = vmul.f32 0.5, %v53_v40  ;;  %v56_v58 = vld [vmem:[#allocation2 + $0x60] sm:$0xff]  ;;  %v57_v0 = vld [vmem:[#allocation2 + $0x68] sm:$0xff] }
  0x16   :  { %158 = vst [vmem:[#allocation7 + $0x10] sm:$0xff] %v194_v37  ;;  %v115_v55 = vadd.f32 %v99_v45, %v67_v44  ;;  %v101_v57 = vmul.f32 0.5, %v85_v41  ;;  %v88_v59 = vld [vmem:[#allocation5 + $0x60] sm:$0xff]  ;;  %v70_v62 = vmul.f32 0.5, %v54_v46  ;;  %v102_v63 = vmul.f32 0.5, %v86_v47  ;;  %v89_v1 = vld [vmem:[#allocation5 + $0x68] sm:$0xff] }
  0x17   :  { %159 = vst [vmem:[#allocation7 + $0x18] sm:$0xff] %v195_v42  ;;  %v198_v60 = vclamps-f32 %v114_v49, 1.0  ;;  %v116_v61 = vadd.f32 %v100_v51, %v68_v50  ;;  %v71_v4 = vmul.f32 0.5, %v55_v52  ;;  %v103_v5 = vmul.f32 0.5, %v87_v53  ;;  %v58_v6 = vld [vmem:[#allocation2 + $0x70] sm:$0xff]  ;;  %v59_v12 = vld [vmem:[#allocation2 + $0x78] sm:$0xff] }
  0x18   :  { %160 = vst [vmem:[#allocation7 + $0x20] sm:$0xff] %v196_v48  ;;  %v199_v2 = vclamps-f32 %v115_v55, 1.0  ;;  %v117_v3 = vadd.f32 %v101_v57, %v69_v56  ;;  %v90_v7 = vld [vmem:[#allocation5 + $0x70] sm:$0xff]  ;;  %v118_v9 = vadd.f32 %v102_v63, %v70_v62  ;;  %v72_v10 = vmul.f32 0.5, %v56_v58  ;;  %v91_v13 = vld [vmem:[#allocation5 + $0x78] sm:$0xff] }
  0x19   :  { %161 = vst [vmem:[#allocation7 + $0x28] sm:$0xff] %v197_v54  ;;  %v200_v8 = vclamps-f32 %v116_v61, 1.0  ;;  %v104_v11 = vmul.f32 0.5, %v88_v59  ;;  %v119_v15 = vadd.f32 %v103_v5, %v71_v4  ;;  %v73_v16 = vmul.f32 0.5, %v57_v0 }
  0x1a   :  { %162 = vst [vmem:[#allocation7 + $0x30] sm:$0xff] %v198_v60  ;;  %v201_v14 = vclamps-f32 %v117_v3, 1.0  ;;  %v105_v17 = vmul.f32 0.5, %v89_v1  ;;  %v202_v18 = vclamps-f32 %v118_v9, 1.0  ;;  %v74_v20 = vmul.f32 0.5, %v58_v6 }
  0x1b   :  { %163 = vst [vmem:[#allocation7 + $0x38] sm:$0xff] %v199_v2  ;;  %v120_v19 = vadd.f32 %v104_v11, %v72_v10  ;;  %v106_v21 = vmul.f32 0.5, %v90_v7  ;;  %v203_v22 = vclamps-f32 %v119_v15, 1.0  ;;  %v75_v24 = vmul.f32 0.5, %v59_v12 }
  0x1c   :  { %164 = vst [vmem:[#allocation7 + $0x40] sm:$0xff] %v200_v8  ;;  %v121_v23 = vadd.f32 %v105_v17, %v73_v16  ;;  %v107_v25 = vmul.f32 0.5, %v91_v13 }
  0x1d   :  { %165 = vst [vmem:[#allocation7 + $0x48] sm:$0xff] %v201_v14  ;;  %v204_v26 = vclamps-f32 %v120_v19, 1.0  ;;  %v122_v27 = vadd.f32 %v106_v21, %v74_v20 }
  0x1e   :  { %166 = vst [vmem:[#allocation7 + $0x50] sm:$0xff] %v202_v18  ;;  %v205_v28 = vclamps-f32 %v121_v23, 1.0  ;;  %v123_v29 = vadd.f32 %v107_v25, %v75_v24 }
  0x1f   :  { %167 = vst [vmem:[#allocation7 + $0x58] sm:$0xff] %v203_v22  ;;  %v206_v30 = vclamps-f32 %v122_v27, 1.0 }
  0x20   :  { %168 = vst [vmem:[#allocation7 + $0x60] sm:$0xff] %v204_v26  ;;  %v207_v31 = vclamps-f32 %v123_v29, 1.0 }
  0x21   :  { %169 = vst [vmem:[#allocation7 + $0x68] sm:$0xff] %v205_v28 }
  0x22   :  { %170 = vst [vmem:[#allocation7 + $0x70] sm:$0xff] %v206_v30 }
  0x23   :  { %171 = vst [vmem:[#allocation7 + $0x78] sm:$0xff] %v207_v31 }
  0x24   :  { %184 = dma.vmem_to_hbm [thread:$0]  %s177_s1, 2048, %s179_s23, [#allocation4], %s292_s17, %s292_s17, %s293_s18  }
  0x25   :  { %289 = dma.done.wait [#allocation4], 2048  }
  0x26   :  { %290 = vsyncadd [#allocation4], 4294965248 }
  0x27   :  { %189 = vsyncpa [#allocation3], 1 }
  0x28   :  { %190 = vsyncpa [#allocation6], 1 }
  0x29   :  { %191 = vsyncpa [#allocation4], 1 }

</bundles_post_ra>
